<compile_context>
chip_gen: v7x
topology: tpu7x:2x2x1
jax: 0.10.0
libtpu: 0.0.40
codegen_flags: <defaults>
</compile_context>

<pallas_src>
import jax
import jax.numpy as jnp
from jax import lax
from jax.experimental import pallas as pl
from jax.experimental.pallas import tpu as pltpu


def _embeddings_kernel(ids_ref, tok_hbm, pos_ref, gamma_ref, beta_ref, out_ref, sem):
    """One (batch row, seq tile): DMA-gather token rows -> add pos -> LayerNorm, in place."""
    b = pl.program_id(0)
    st = pl.program_id(1)
    tS = out_ref.shape[0]
    V = tok_hbm.shape[0]
    base = st * tS

    # 1) Row gather: token_table[id] (HBM) -> out_ref[s, :] (VMEM) via the DMA engine.
    #    All tS row copies are issued before any wait so they overlap each other.
    def issue(s, carry):
        tok_id = jnp.clip(ids_ref[b, base + s], 0, V - 1)  # guard OOB ids (DMAs are bounds-checked)
        pltpu.make_async_copy(tok_hbm.at[tok_id], out_ref.at[s], sem).start()
        return carry

    lax.fori_loop(0, tS, issue, 0, unroll=8)

    # 2) Drain: one wait per issued row copy (same shape => same byte count on the semaphore).
    def drain(s, carry):
        pltpu.make_async_copy(tok_hbm.at[0], out_ref.at[0], sem).wait()
        return carry

    lax.fori_loop(0, tS, drain, 0, unroll=8)

    # 3) token + position, then LayerNorm over the hidden dim (eps = 1e-12), all in f32.
    x = out_ref[...].astype(jnp.float32) + pos_ref[...].astype(jnp.float32)
    mean = jnp.mean(x, axis=-1, keepdims=True)
    var = jnp.mean(jnp.square(x - mean), axis=-1, keepdims=True)
    y = (x - mean) * lax.rsqrt(var + 1e-12)
    y = y * gamma_ref[...].astype(jnp.float32) + beta_ref[...].astype(jnp.float32)

    # TODO(synk): dropout is identity (eval mode); training-mode dropout would use
    # pltpu.prng_seed + pltpu.stateful_bernoulli.
    out_ref[...] = y.astype(out_ref.dtype)


def _pick_seq_tile(S):
    for t in (128, 64, 32, 16, 8):
        if S % t == 0:
            return t
    return S  # small / odd S: a single tile covering the whole sequence


def my_embeddings(input_ids, token_table, pos_table, gamma, beta):
    B, S = input_ids.shape
    V, H = token_table.shape
    P, _ = pos_table.shape
    assert P >= S, "sequence longer than max_position_embeddings"

    tS = _pick_seq_tile(S)
    nS = S // tS

    # Only the first S position rows are ever used; slicing also keeps the block shape legal
    # when S is a single non-multiple-of-8 tile.
    pos_used = pos_table[:S]
    gamma2d = gamma.reshape(1, H)
    beta2d = beta.reshape(1, H)

    grid_spec = pltpu.PrefetchScalarGridSpec(
        num_scalar_prefetch=1,            # input_ids -> SMEM; drives the in-kernel row gather
        grid=(B, nS),
        in_specs=[
            # Vocab table stays in HBM; rows are gathered by explicit DMA in the kernel.
            pl.BlockSpec(memory_space=pl.ANY),
            # Position rows for this sequence tile only.
            pl.BlockSpec((tS, H), lambda b, s, ids: (s, 0)),
            pl.BlockSpec((1, H), lambda b, s, ids: (0, 0)),   # layernorm gamma
            pl.BlockSpec((1, H), lambda b, s, ids: (0, 0)),   # layernorm beta
        ],
        # The output VMEM block doubles as the gather/working slab (no extra (S,H) scratch).
        out_specs=pl.BlockSpec((None, tS, H), lambda b, s, ids: (b, s, 0)),
        scratch_shapes=[pltpu.SemaphoreType.DMA],
    )

    return pl.pallas_call(
        _embeddings_kernel,
        out_shape=jax.ShapeDtypeStruct((B, S, H), jnp.float32),
        grid_spec=grid_spec,
        compiler_params=pltpu.CompilerParams(
            dimension_semantics=("parallel", "parallel"),
        ),
    )(input_ids.astype(jnp.int32), token_table, pos_used, gamma2d, beta2d)


if __name__ == "__main__":
    # Small config: vocab=100, max_position_embeddings=16, hidden=128, batch=2, seq=8.
    B, S, V, P, H = 2, 8, 100, 16, 128

    key = jax.random.PRNGKey(0)
    k_ids, k_tok, k_pos = jax.random.split(key, 3)

    input_ids = jax.random.randint(k_ids, (B, S), minval=0, maxval=V, dtype=jnp.int32)
    token_table = jax.random.normal(k_tok, (V, H), dtype=jnp.float32)   # nn.Embedding ~ N(0,1)
    pos_table = jax.random.normal(k_pos, (P, H), dtype=jnp.float32)
    gamma = jnp.ones((H,), dtype=jnp.float32)                            # nn.LayerNorm init
    beta = jnp.zeros((H,), dtype=jnp.float32)

    out = my_embeddings(input_ids, token_table, pos_table, gamma, beta)
    out = jax.block_until_ready(out)

    # Pure-JAX reference (eval-mode dropout = identity).
    x_ref = token_table[input_ids] + pos_table[jnp.arange(S)][None, :, :]
    mean = jnp.mean(x_ref, axis=-1, keepdims=True)
    var = jnp.mean(jnp.square(x_ref - mean), axis=-1, keepdims=True)
    ref = (x_ref - mean) / jnp.sqrt(var + 1e-12) * gamma + beta
    assert jnp.allclose(out, ref, atol=1e-5, rtol=1e-5), "mismatch vs reference"

    print("KERNEL_OK")
</pallas_src>

<mosaic_0001>
module attributes {stable_mosaic.version = 11 : i64} {
  func.func @_embeddings_kernel(%arg0: i32, %arg1: i32, %arg2: memref<2x8xi32, #tpu.memory_space<smem>>, %arg3: memref<100x128xf32, #tpu.memory_space<any>>, %arg4: memref<8x128xf32, #tpu.memory_space<vmem>>, %arg5: memref<1x128xf32, #tpu.memory_space<vmem>>, %arg6: memref<1x128xf32, #tpu.memory_space<vmem>>, %arg7: memref<1x8x128xf32, #tpu.memory_space<vmem>>, %arg8: memref<!tpu.dma_semaphore, #tpu.memory_space<semaphore_mem>>) attributes {dimension_semantics = [#tpu.dimension_semantics<parallel>, #tpu.dimension_semantics<parallel>], iteration_bounds = array<i64: 2, 1>, scalar_prefetch = 1 : i64, scratch_operands = 1 : i64, tpu.core_type = #tpu.core_type<tc>, window_params = [{}, {transform_indices = @transform_1, window_bounds = array<i64: 8, 128>}, {pipeline_mode = #tpu.pipeline_mode<synchronous>, transform_indices = @transform_2, window_bounds = array<i64: 1, 128>}, {pipeline_mode = #tpu.pipeline_mode<synchronous>, transform_indices = @transform_3, window_bounds = array<i64: 1, 128>}, {transform_indices = @transform_4, window_bounds = array<i64: 1, 8, 128>}]} {
    %c8_i32 = arith.constant 8 : i32
    %0 = arith.muli %arg1, %c8_i32 : i32
    %c0_i32 = arith.constant 0 : i32
    %1 = arith.addi %0, %c0_i32 : i32
    %2 = arith.index_cast %arg0 : i32 to index
    %3 = arith.index_cast %1 : i32 to index
    %4 = memref.load %arg2[%2, %3] : memref<2x8xi32, #tpu.memory_space<smem>>
    %c0_i32_0 = arith.constant 0 : i32
    %c99_i32 = arith.constant 99 : i32
    %5 = arith.maxsi %c0_i32_0, %4 : i32
    %6 = arith.minsi %c99_i32, %5 : i32
    %c0_i32_1 = arith.constant 0 : i32
    %7 = tpu.memref_slice %arg3[%6, %c0_i32_1] : memref<100x128xf32, #tpu.memory_space<any>> -> memref<1x128xf32, #tpu.memory_space<any>>
    %8 = tpu.memref_squeeze %7 : memref<1x128xf32, #tpu.memory_space<any>> -> memref<128xf32, #tpu.memory_space<any>>
    %c0_i32_2 = arith.constant 0 : i32
    %c0_i32_3 = arith.constant 0 : i32
    %9 = tpu.memref_slice %arg7[%c0_i32_2, %c0_i32, %c0_i32_3] : memref<1x8x128xf32, #tpu.memory_space<vmem>> -> memref<1x1x128xf32, #tpu.memory_space<vmem>>
    %10 = tpu.memref_squeeze %9 : memref<1x1x128xf32, #tpu.memory_space<vmem>> -> memref<128xf32, #tpu.memory_space<vmem>>
    tpu.enqueue_dma source(%8 : memref<128xf32, #tpu.memory_space<any>>) target(%10 : memref<128xf32, #tpu.memory_space<vmem>>) target_semaphore(%arg8 : memref<!tpu.dma_semaphore, #tpu.memory_space<semaphore_mem>>)
    %c1_i32 = arith.constant 1 : i32
    %11 = arith.addi %0, %c1_i32 : i32
    %12 = arith.index_cast %arg0 : i32 to index
    %13 = arith.index_cast %11 : i32 to index
    %14 = memref.load %arg2[%12, %13] : memref<2x8xi32, #tpu.memory_space<smem>>
    %c0_i32_4 = arith.constant 0 : i32
    %c99_i32_5 = arith.constant 99 : i32
    %15 = arith.maxsi %c0_i32_4, %14 : i32
    %16 = arith.minsi %c99_i32_5, %15 : i32
    %c0_i32_6 = arith.constant 0 : i32
    %17 = tpu.memref_slice %arg3[%16, %c0_i32_6] : memref<100x128xf32, #tpu.memory_space<any>> -> memref<1x128xf32, #tpu.memory_space<any>>
    %18 = tpu.memref_squeeze %17 : memref<1x128xf32, #tpu.memory_space<any>> -> memref<128xf32, #tpu.memory_space<any>>
    %c0_i32_7 = arith.constant 0 : i32
    %c0_i32_8 = arith.constant 0 : i32
    %19 = tpu.memref_slice %arg7[%c0_i32_7, %c1_i32, %c0_i32_8] : memref<1x8x128xf32, #tpu.memory_space<vmem>> -> memref<1x1x128xf32, #tpu.memory_space<vmem>>
    %20 = tpu.memref_squeeze %19 : memref<1x1x128xf32, #tpu.memory_space<vmem>> -> memref<128xf32, #tpu.memory_space<vmem>>
    tpu.enqueue_dma source(%18 : memref<128xf32, #tpu.memory_space<any>>) target(%20 : memref<128xf32, #tpu.memory_space<vmem>>) target_semaphore(%arg8 : memref<!tpu.dma_semaphore, #tpu.memory_space<semaphore_mem>>)
    %c2_i32 = arith.constant 2 : i32
    %21 = arith.addi %0, %c2_i32 : i32
    %22 = arith.index_cast %arg0 : i32 to index
    %23 = arith.index_cast %21 : i32 to index
    %24 = memref.load %arg2[%22, %23] : memref<2x8xi32, #tpu.memory_space<smem>>
    %c0_i32_9 = arith.constant 0 : i32
    %c99_i32_10 = arith.constant 99 : i32
    %25 = arith.maxsi %c0_i32_9, %24 : i32
    %26 = arith.minsi %c99_i32_10, %25 : i32
    %c0_i32_11 = arith.constant 0 : i32
    %27 = tpu.memref_slice %arg3[%26, %c0_i32_11] : memref<100x128xf32, #tpu.memory_space<any>> -> memref<1x128xf32, #tpu.memory_space<any>>
    %28 = tpu.memref_squeeze %27 : memref<1x128xf32, #tpu.memory_space<any>> -> memref<128xf32, #tpu.memory_space<any>>
    %c0_i32_12 = arith.constant 0 : i32
    %c0_i32_13 = arith.constant 0 : i32
    %29 = tpu.memref_slice %arg7[%c0_i32_12, %c2_i32, %c0_i32_13] : memref<1x8x128xf32, #tpu.memory_space<vmem>> -> memref<1x1x128xf32, #tpu.memory_space<vmem>>
    %30 = tpu.memref_squeeze %29 : memref<1x1x128xf32, #tpu.memory_space<vmem>> -> memref<128xf32, #tpu.memory_space<vmem>>
    tpu.enqueue_dma source(%28 : memref<128xf32, #tpu.memory_space<any>>) target(%30 : memref<128xf32, #tpu.memory_space<vmem>>) target_semaphore(%arg8 : memref<!tpu.dma_semaphore, #tpu.memory_space<semaphore_mem>>)
    %c3_i32 = arith.constant 3 : i32
    %31 = arith.addi %0, %c3_i32 : i32
    %32 = arith.index_cast %arg0 : i32 to index
    %33 = arith.index_cast %31 : i32 to index
    %34 = memref.load %arg2[%32, %33] : memref<2x8xi32, #tpu.memory_space<smem>>
    %c0_i32_14 = arith.constant 0 : i32
    %c99_i32_15 = arith.constant 99 : i32
    %35 = arith.maxsi %c0_i32_14, %34 : i32
    %36 = arith.minsi %c99_i32_15, %35 : i32
    %c0_i32_16 = arith.constant 0 : i32
    %37 = tpu.memref_slice %arg3[%36, %c0_i32_16] : memref<100x128xf32, #tpu.memory_space<any>> -> memref<1x128xf32, #tpu.memory_space<any>>
    %38 = tpu.memref_squeeze %37 : memref<1x128xf32, #tpu.memory_space<any>> -> memref<128xf32, #tpu.memory_space<any>>
    %c0_i32_17 = arith.constant 0 : i32
    %c0_i32_18 = arith.constant 0 : i32
    %39 = tpu.memref_slice %arg7[%c0_i32_17, %c3_i32, %c0_i32_18] : memref<1x8x128xf32, #tpu.memory_space<vmem>> -> memref<1x1x128xf32, #tpu.memory_space<vmem>>
    %40 = tpu.memref_squeeze %39 : memref<1x1x128xf32, #tpu.memory_space<vmem>> -> memref<128xf32, #tpu.memory_space<vmem>>
    tpu.enqueue_dma source(%38 : memref<128xf32, #tpu.memory_space<any>>) target(%40 : memref<128xf32, #tpu.memory_space<vmem>>) target_semaphore(%arg8 : memref<!tpu.dma_semaphore, #tpu.memory_space<semaphore_mem>>)
    %c4_i32 = arith.constant 4 : i32
    %41 = arith.addi %0, %c4_i32 : i32
    %42 = arith.index_cast %arg0 : i32 to index
    %43 = arith.index_cast %41 : i32 to index
    %44 = memref.load %arg2[%42, %43] : memref<2x8xi32, #tpu.memory_space<smem>>
    %c0_i32_19 = arith.constant 0 : i32
    %c99_i32_20 = arith.constant 99 : i32
    %45 = arith.maxsi %c0_i32_19, %44 : i32
    %46 = arith.minsi %c99_i32_20, %45 : i32
    %c0_i32_21 = arith.constant 0 : i32
    %47 = tpu.memref_slice %arg3[%46, %c0_i32_21] : memref<100x128xf32, #tpu.memory_space<any>> -> memref<1x128xf32, #tpu.memory_space<any>>
    %48 = tpu.memref_squeeze %47 : memref<1x128xf32, #tpu.memory_space<any>> -> memref<128xf32, #tpu.memory_space<any>>
    %c0_i32_22 = arith.constant 0 : i32
    %c0_i32_23 = arith.constant 0 : i32
    %49 = tpu.memref_slice %arg7[%c0_i32_22, %c4_i32, %c0_i32_23] : memref<1x8x128xf32, #tpu.memory_space<vmem>> -> memref<1x1x128xf32, #tpu.memory_space<vmem>>
    %50 = tpu.memref_squeeze %49 : memref<1x1x128xf32, #tpu.memory_space<vmem>> -> memref<128xf32, #tpu.memory_space<vmem>>
    tpu.enqueue_dma source(%48 : memref<128xf32, #tpu.memory_space<any>>) target(%50 : memref<128xf32, #tpu.memory_space<vmem>>) target_semaphore(%arg8 : memref<!tpu.dma_semaphore, #tpu.memory_space<semaphore_mem>>)
    %c5_i32 = arith.constant 5 : i32
    %51 = arith.addi %0, %c5_i32 : i32
    %52 = arith.index_cast %arg0 : i32 to index
    %53 = arith.index_cast %51 : i32 to index
    %54 = memref.load %arg2[%52, %53] : memref<2x8xi32, #tpu.memory_space<smem>>
    %c0_i32_24 = arith.constant 0 : i32
    %c99_i32_25 = arith.constant 99 : i32
    %55 = arith.maxsi %c0_i32_24, %54 : i32
    %56 = arith.minsi %c99_i32_25, %55 : i32
    %c0_i32_26 = arith.constant 0 : i32
    %57 = tpu.memref_slice %arg3[%56, %c0_i32_26] : memref<100x128xf32, #tpu.memory_space<any>> -> memref<1x128xf32, #tpu.memory_space<any>>
    %58 = tpu.memref_squeeze %57 : memref<1x128xf32, #tpu.memory_space<any>> -> memref<128xf32, #tpu.memory_space<any>>
    %c0_i32_27 = arith.constant 0 : i32
    %c0_i32_28 = arith.constant 0 : i32
    %59 = tpu.memref_slice %arg7[%c0_i32_27, %c5_i32, %c0_i32_28] : memref<1x8x128xf32, #tpu.memory_space<vmem>> -> memref<1x1x128xf32, #tpu.memory_space<vmem>>
    %60 = tpu.memref_squeeze %59 : memref<1x1x128xf32, #tpu.memory_space<vmem>> -> memref<128xf32, #tpu.memory_space<vmem>>
    tpu.enqueue_dma source(%58 : memref<128xf32, #tpu.memory_space<any>>) target(%60 : memref<128xf32, #tpu.memory_space<vmem>>) target_semaphore(%arg8 : memref<!tpu.dma_semaphore, #tpu.memory_space<semaphore_mem>>)
    %c6_i32 = arith.constant 6 : i32
    %61 = arith.addi %0, %c6_i32 : i32
    %62 = arith.index_cast %arg0 : i32 to index
    %63 = arith.index_cast %61 : i32 to index
    %64 = memref.load %arg2[%62, %63] : memref<2x8xi32, #tpu.memory_space<smem>>
    %c0_i32_29 = arith.constant 0 : i32
    %c99_i32_30 = arith.constant 99 : i32
    %65 = arith.maxsi %c0_i32_29, %64 : i32
    %66 = arith.minsi %c99_i32_30, %65 : i32
    %c0_i32_31 = arith.constant 0 : i32
    %67 = tpu.memref_slice %arg3[%66, %c0_i32_31] : memref<100x128xf32, #tpu.memory_space<any>> -> memref<1x128xf32, #tpu.memory_space<any>>
    %68 = tpu.memref_squeeze %67 : memref<1x128xf32, #tpu.memory_space<any>> -> memref<128xf32, #tpu.memory_space<any>>
    %c0_i32_32 = arith.constant 0 : i32
    %c0_i32_33 = arith.constant 0 : i32
    %69 = tpu.memref_slice %arg7[%c0_i32_32, %c6_i32, %c0_i32_33] : memref<1x8x128xf32, #tpu.memory_space<vmem>> -> memref<1x1x128xf32, #tpu.memory_space<vmem>>
    %70 = tpu.memref_squeeze %69 : memref<1x1x128xf32, #tpu.memory_space<vmem>> -> memref<128xf32, #tpu.memory_space<vmem>>
    tpu.enqueue_dma source(%68 : memref<128xf32, #tpu.memory_space<any>>) target(%70 : memref<128xf32, #tpu.memory_space<vmem>>) target_semaphore(%arg8 : memref<!tpu.dma_semaphore, #tpu.memory_space<semaphore_mem>>)
    %c7_i32 = arith.constant 7 : i32
    %71 = arith.addi %0, %c7_i32 : i32
    %72 = arith.index_cast %arg0 : i32 to index
    %73 = arith.index_cast %71 : i32 to index
    %74 = memref.load %arg2[%72, %73] : memref<2x8xi32, #tpu.memory_space<smem>>
    %c0_i32_34 = arith.constant 0 : i32
    %c99_i32_35 = arith.constant 99 : i32
    %75 = arith.maxsi %c0_i32_34, %74 : i32
    %76 = arith.minsi %c99_i32_35, %75 : i32
    %c0_i32_36 = arith.constant 0 : i32
    %77 = tpu.memref_slice %arg3[%76, %c0_i32_36] : memref<100x128xf32, #tpu.memory_space<any>> -> memref<1x128xf32, #tpu.memory_space<any>>
    %78 = tpu.memref_squeeze %77 : memref<1x128xf32, #tpu.memory_space<any>> -> memref<128xf32, #tpu.memory_space<any>>
    %c0_i32_37 = arith.constant 0 : i32
    %c0_i32_38 = arith.constant 0 : i32
    %79 = tpu.memref_slice %arg7[%c0_i32_37, %c7_i32, %c0_i32_38] : memref<1x8x128xf32, #tpu.memory_space<vmem>> -> memref<1x1x128xf32, #tpu.memory_space<vmem>>
    %80 = tpu.memref_squeeze %79 : memref<1x1x128xf32, #tpu.memory_space<vmem>> -> memref<128xf32, #tpu.memory_space<vmem>>
    tpu.enqueue_dma source(%78 : memref<128xf32, #tpu.memory_space<any>>) target(%80 : memref<128xf32, #tpu.memory_space<vmem>>) target_semaphore(%arg8 : memref<!tpu.dma_semaphore, #tpu.memory_space<semaphore_mem>>)
    %c8_i32_39 = arith.constant 8 : i32
    %c0_i32_40 = arith.constant 0 : i32
    %c0_i32_41 = arith.constant 0 : i32
    %c0_i32_42 = arith.constant 0 : i32
    %c0_i32_43 = arith.constant 0 : i32
    %81 = tpu.memref_slice %arg3[%c0_i32_41, %c0_i32_43] : memref<100x128xf32, #tpu.memory_space<any>> -> memref<1x128xf32, #tpu.memory_space<any>>
    %82 = tpu.memref_squeeze %81 : memref<1x128xf32, #tpu.memory_space<any>> -> memref<128xf32, #tpu.memory_space<any>>
    %c0_i32_44 = arith.constant 0 : i32
    %c0_i32_45 = arith.constant 0 : i32
    %83 = tpu.memref_slice %arg7[%c0_i32_44, %c0_i32_42, %c0_i32_45] : memref<1x8x128xf32, #tpu.memory_space<vmem>> -> memref<1x1x128xf32, #tpu.memory_space<vmem>>
    %84 = tpu.memref_squeeze %83 : memref<1x1x128xf32, #tpu.memory_space<vmem>> -> memref<128xf32, #tpu.memory_space<vmem>>
    tpu.wait_dma2 semaphore(%arg8 : memref<!tpu.dma_semaphore, #tpu.memory_space<semaphore_mem>>) src(%82 : memref<128xf32, #tpu.memory_space<any>>) dst(%84 : memref<128xf32, #tpu.memory_space<vmem>>)
    %c1_i32_46 = arith.constant 1 : i32
    %c0_i32_47 = arith.constant 0 : i32
    %c0_i32_48 = arith.constant 0 : i32
    %c0_i32_49 = arith.constant 0 : i32
    %85 = tpu.memref_slice %arg3[%c0_i32_47, %c0_i32_49] : memref<100x128xf32, #tpu.memory_space<any>> -> memref<1x128xf32, #tpu.memory_space<any>>
    %86 = tpu.memref_squeeze %85 : memref<1x128xf32, #tpu.memory_space<any>> -> memref<128xf32, #tpu.memory_space<any>>
    %c0_i32_50 = arith.constant 0 : i32
    %c0_i32_51 = arith.constant 0 : i32
    %87 = tpu.memref_slice %arg7[%c0_i32_50, %c0_i32_48, %c0_i32_51] : memref<1x8x128xf32, #tpu.memory_space<vmem>> -> memref<1x1x128xf32, #tpu.memory_space<vmem>>
    %88 = tpu.memref_squeeze %87 : memref<1x1x128xf32, #tpu.memory_space<vmem>> -> memref<128xf32, #tpu.memory_space<vmem>>
    tpu.wait_dma2 semaphore(%arg8 : memref<!tpu.dma_semaphore, #tpu.memory_space<semaphore_mem>>) src(%86 : memref<128xf32, #tpu.memory_space<any>>) dst(%88 : memref<128xf32, #tpu.memory_space<vmem>>)
    %c2_i32_52 = arith.constant 2 : i32
    %c0_i32_53 = arith.constant 0 : i32
    %c0_i32_54 = arith.constant 0 : i32
    %c0_i32_55 = arith.constant 0 : i32
    %89 = tpu.memref_slice %arg3[%c0_i32_53, %c0_i32_55] : memref<100x128xf32, #tpu.memory_space<any>> -> memref<1x128xf32, #tpu.memory_space<any>>
    %90 = tpu.memref_squeeze %89 : memref<1x128xf32, #tpu.memory_space<any>> -> memref<128xf32, #tpu.memory_space<any>>
    %c0_i32_56 = arith.constant 0 : i32
    %c0_i32_57 = arith.constant 0 : i32
    %91 = tpu.memref_slice %arg7[%c0_i32_56, %c0_i32_54, %c0_i32_57] : memref<1x8x128xf32, #tpu.memory_space<vmem>> -> memref<1x1x128xf32, #tpu.memory_space<vmem>>
    %92 = tpu.memref_squeeze %91 : memref<1x1x128xf32, #tpu.memory_space<vmem>> -> memref<128xf32, #tpu.memory_space<vmem>>
    tpu.wait_dma2 semaphore(%arg8 : memref<!tpu.dma_semaphore, #tpu.memory_space<semaphore_mem>>) src(%90 : memref<128xf32, #tpu.memory_space<any>>) dst(%92 : memref<128xf32, #tpu.memory_space<vmem>>)
    %c3_i32_58 = arith.constant 3 : i32
    %c0_i32_59 = arith.constant 0 : i32
    %c0_i32_60 = arith.constant 0 : i32
    %c0_i32_61 = arith.constant 0 : i32
    %93 = tpu.memref_slice %arg3[%c0_i32_59, %c0_i32_61] : memref<100x128xf32, #tpu.memory_space<any>> -> memref<1x128xf32, #tpu.memory_space<any>>
    %94 = tpu.memref_squeeze %93 : memref<1x128xf32, #tpu.memory_space<any>> -> memref<128xf32, #tpu.memory_space<any>>
    %c0_i32_62 = arith.constant 0 : i32
    %c0_i32_63 = arith.constant 0 : i32
    %95 = tpu.memref_slice %arg7[%c0_i32_62, %c0_i32_60, %c0_i32_63] : memref<1x8x128xf32, #tpu.memory_space<vmem>> -> memref<1x1x128xf32, #tpu.memory_space<vmem>>
    %96 = tpu.memref_squeeze %95 : memref<1x1x128xf32, #tpu.memory_space<vmem>> -> memref<128xf32, #tpu.memory_space<vmem>>
    tpu.wait_dma2 semaphore(%arg8 : memref<!tpu.dma_semaphore, #tpu.memory_space<semaphore_mem>>) src(%94 : memref<128xf32, #tpu.memory_space<any>>) dst(%96 : memref<128xf32, #tpu.memory_space<vmem>>)
    %c4_i32_64 = arith.constant 4 : i32
    %c0_i32_65 = arith.constant 0 : i32
    %c0_i32_66 = arith.constant 0 : i32
    %c0_i32_67 = arith.constant 0 : i32
    %97 = tpu.memref_slice %arg3[%c0_i32_65, %c0_i32_67] : memref<100x128xf32, #tpu.memory_space<any>> -> memref<1x128xf32, #tpu.memory_space<any>>
    %98 = tpu.memref_squeeze %97 : memref<1x128xf32, #tpu.memory_space<any>> -> memref<128xf32, #tpu.memory_space<any>>
    %c0_i32_68 = arith.constant 0 : i32
    %c0_i32_69 = arith.constant 0 : i32
    %99 = tpu.memref_slice %arg7[%c0_i32_68, %c0_i32_66, %c0_i32_69] : memref<1x8x128xf32, #tpu.memory_space<vmem>> -> memref<1x1x128xf32, #tpu.memory_space<vmem>>
    %100 = tpu.memref_squeeze %99 : memref<1x1x128xf32, #tpu.memory_space<vmem>> -> memref<128xf32, #tpu.memory_space<vmem>>
    tpu.wait_dma2 semaphore(%arg8 : memref<!tpu.dma_semaphore, #tpu.memory_space<semaphore_mem>>) src(%98 : memref<128xf32, #tpu.memory_space<any>>) dst(%100 : memref<128xf32, #tpu.memory_space<vmem>>)
    %c5_i32_70 = arith.constant 5 : i32
    %c0_i32_71 = arith.constant 0 : i32
    %c0_i32_72 = arith.constant 0 : i32
    %c0_i32_73 = arith.constant 0 : i32
    %101 = tpu.memref_slice %arg3[%c0_i32_71, %c0_i32_73] : memref<100x128xf32, #tpu.memory_space<any>> -> memref<1x128xf32, #tpu.memory_space<any>>
    %102 = tpu.memref_squeeze %101 : memref<1x128xf32, #tpu.memory_space<any>> -> memref<128xf32, #tpu.memory_space<any>>
    %c0_i32_74 = arith.constant 0 : i32
    %c0_i32_75 = arith.constant 0 : i32
    %103 = tpu.memref_slice %arg7[%c0_i32_74, %c0_i32_72, %c0_i32_75] : memref<1x8x128xf32, #tpu.memory_space<vmem>> -> memref<1x1x128xf32, #tpu.memory_space<vmem>>
    %104 = tpu.memref_squeeze %103 : memref<1x1x128xf32, #tpu.memory_space<vmem>> -> memref<128xf32, #tpu.memory_space<vmem>>
    tpu.wait_dma2 semaphore(%arg8 : memref<!tpu.dma_semaphore, #tpu.memory_space<semaphore_mem>>) src(%102 : memref<128xf32, #tpu.memory_space<any>>) dst(%104 : memref<128xf32, #tpu.memory_space<vmem>>)
    %c6_i32_76 = arith.constant 6 : i32
    %c0_i32_77 = arith.constant 0 : i32
    %c0_i32_78 = arith.constant 0 : i32
    %c0_i32_79 = arith.constant 0 : i32
    %105 = tpu.memref_slice %arg3[%c0_i32_77, %c0_i32_79] : memref<100x128xf32, #tpu.memory_space<any>> -> memref<1x128xf32, #tpu.memory_space<any>>
    %106 = tpu.memref_squeeze %105 : memref<1x128xf32, #tpu.memory_space<any>> -> memref<128xf32, #tpu.memory_space<any>>
    %c0_i32_80 = arith.constant 0 : i32
    %c0_i32_81 = arith.constant 0 : i32
    %107 = tpu.memref_slice %arg7[%c0_i32_80, %c0_i32_78, %c0_i32_81] : memref<1x8x128xf32, #tpu.memory_space<vmem>> -> memref<1x1x128xf32, #tpu.memory_space<vmem>>
    %108 = tpu.memref_squeeze %107 : memref<1x1x128xf32, #tpu.memory_space<vmem>> -> memref<128xf32, #tpu.memory_space<vmem>>
    tpu.wait_dma2 semaphore(%arg8 : memref<!tpu.dma_semaphore, #tpu.memory_space<semaphore_mem>>) src(%106 : memref<128xf32, #tpu.memory_space<any>>) dst(%108 : memref<128xf32, #tpu.memory_space<vmem>>)
    %c7_i32_82 = arith.constant 7 : i32
    %c0_i32_83 = arith.constant 0 : i32
    %c0_i32_84 = arith.constant 0 : i32
    %c0_i32_85 = arith.constant 0 : i32
    %109 = tpu.memref_slice %arg3[%c0_i32_83, %c0_i32_85] : memref<100x128xf32, #tpu.memory_space<any>> -> memref<1x128xf32, #tpu.memory_space<any>>
    %110 = tpu.memref_squeeze %109 : memref<1x128xf32, #tpu.memory_space<any>> -> memref<128xf32, #tpu.memory_space<any>>
    %c0_i32_86 = arith.constant 0 : i32
    %c0_i32_87 = arith.constant 0 : i32
    %111 = tpu.memref_slice %arg7[%c0_i32_86, %c0_i32_84, %c0_i32_87] : memref<1x8x128xf32, #tpu.memory_space<vmem>> -> memref<1x1x128xf32, #tpu.memory_space<vmem>>
    %112 = tpu.memref_squeeze %111 : memref<1x1x128xf32, #tpu.memory_space<vmem>> -> memref<128xf32, #tpu.memory_space<vmem>>
    tpu.wait_dma2 semaphore(%arg8 : memref<!tpu.dma_semaphore, #tpu.memory_space<semaphore_mem>>) src(%110 : memref<128xf32, #tpu.memory_space<any>>) dst(%112 : memref<128xf32, #tpu.memory_space<vmem>>)
    %c0 = arith.constant 0 : index
    %c0_88 = arith.constant 0 : index
    %c0_89 = arith.constant 0 : index
    %113 = vector.load %arg7[%c0, %c0_88, %c0_89] : memref<1x8x128xf32, #tpu.memory_space<vmem>>, vector<1x8x128xf32>
    %114 = vector.shape_cast %113 : vector<1x8x128xf32> to vector<8x128xf32>
    %c0_90 = arith.constant 0 : index
    %c0_91 = arith.constant 0 : index
    %115 = vector.load %arg4[%c0_90, %c0_91] : memref<8x128xf32, #tpu.memory_space<vmem>>, vector<8x128xf32>
    %116 = arith.addf %114, %115 : vector<8x128xf32>
    %cst = arith.constant dense<0.000000e+00> : vector<8xf32>
    %117 = vector.multi_reduction <add>, %116, %cst [1] : vector<8x128xf32> to vector<8xf32>
    %118 = vector.shape_cast %117 : vector<8xf32> to vector<8x1xf32>
    %cst_92 = arith.constant 1.280000e+02 : f32
    %119 = vector.broadcast %cst_92 : f32 to vector<8x1xf32>
    %120 = arith.divf %118, %119 : vector<8x1xf32>
    %121 = vector.broadcast %120 : vector<8x1xf32> to vector<8x128xf32>
    %122 = arith.subf %116, %121 : vector<8x128xf32>
    %123 = arith.mulf %122, %122 : vector<8x128xf32>
    %cst_93 = arith.constant dense<0.000000e+00> : vector<8xf32>
    %124 = vector.multi_reduction <add>, %123, %cst_93 [1] : vector<8x128xf32> to vector<8xf32>
    %125 = vector.shape_cast %124 : vector<8xf32> to vector<8x1xf32>
    %cst_94 = arith.constant 1.280000e+02 : f32
    %126 = vector.broadcast %cst_94 : f32 to vector<8x1xf32>
    %127 = arith.divf %125, %126 : vector<8x1xf32>
    %128 = vector.broadcast %120 : vector<8x1xf32> to vector<8x128xf32>
    %129 = arith.subf %116, %128 : vector<8x128xf32>
    %cst_95 = arith.constant 9.99999996E-13 : f32
    %130 = vector.broadcast %cst_95 : f32 to vector<8x1xf32>
    %131 = arith.addf %127, %130 : vector<8x1xf32>
    %132 = math.rsqrt %131 : vector<8x1xf32>
    %133 = vector.broadcast %132 : vector<8x1xf32> to vector<8x128xf32>
    %134 = arith.mulf %129, %133 : vector<8x128xf32>
    %c0_96 = arith.constant 0 : index
    %c0_97 = arith.constant 0 : index
    %135 = vector.load %arg5[%c0_96, %c0_97] : memref<1x128xf32, #tpu.memory_space<vmem>>, vector<1x128xf32>
    %136 = vector.broadcast %135 : vector<1x128xf32> to vector<8x128xf32>
    %137 = arith.mulf %134, %136 : vector<8x128xf32>
    %c0_98 = arith.constant 0 : index
    %c0_99 = arith.constant 0 : index
    %138 = vector.load %arg6[%c0_98, %c0_99] : memref<1x128xf32, #tpu.memory_space<vmem>>, vector<1x128xf32>
    %139 = vector.broadcast %138 : vector<1x128xf32> to vector<8x128xf32>
    %140 = arith.addf %137, %139 : vector<8x128xf32>
    %c0_100 = arith.constant 0 : index
    %c0_101 = arith.constant 0 : index
    %c0_102 = arith.constant 0 : index
    %141 = vector.load %arg7[%c0_100, %c0_101, %c0_102] : memref<1x8x128xf32, #tpu.memory_space<vmem>>, vector<1x8x128xf32>
    %142 = vector.shape_cast %141 : vector<1x8x128xf32> to vector<8x128xf32>
    %143 = vector.shape_cast %140 : vector<8x128xf32> to vector<1x8x128xf32>
    tpu.vector_store %arg7[%c0_100, %c0_101, %c0_102], %143 {strides = array<i32>} : memref<1x8x128xf32, #tpu.memory_space<vmem>>, vector<1x8x128xf32>,
    return
  }
  func.func @transform_1(%arg0: i32, %arg1: i32, %arg2: memref<2x8xi32, #tpu.memory_space<smem>>) -> (i32, i32) {
    %c0_i32 = arith.constant 0 : i32
    %c0_i32_0 = arith.constant 0 : i32
    return %arg1, %c0_i32 : i32, i32
  }
  func.func @transform_2(%arg0: i32, %arg1: i32, %arg2: memref<2x8xi32, #tpu.memory_space<smem>>) -> (i32, i32) {
    %c0_i32 = arith.constant 0 : i32
    %c0_i32_0 = arith.constant 0 : i32
    %c0_i32_1 = arith.constant 0 : i32
    return %c0_i32, %c0_i32_0 : i32, i32
  }
  func.func @transform_3(%arg0: i32, %arg1: i32, %arg2: memref<2x8xi32, #tpu.memory_space<smem>>) -> (i32, i32) {
    %c0_i32 = arith.constant 0 : i32
    %c0_i32_0 = arith.constant 0 : i32
    %c0_i32_1 = arith.constant 0 : i32
    return %c0_i32, %c0_i32_0 : i32, i32
  }
  func.func @transform_4(%arg0: i32, %arg1: i32, %arg2: memref<2x8xi32, #tpu.memory_space<smem>>) -> (i32, i32, i32) {
    %c0_i32 = arith.constant 0 : i32
    %c0_i32_0 = arith.constant 0 : i32
    return %arg0, %arg1, %c0_i32 : i32, i32, i32
  }
}

</mosaic_0001>

<bundles_post_ra>
// kernel: tpu_custom_call.1
= control target key start
LH: loop header
LB: loop body
LE: loop exit
PB: predicated region body
PF: predicated region fallthrough
CT: control target
= control target key end

     0   :  { %s1414_s0 = inlined_call_operand.hbm [shape: s32[2,8], index: 0, kind: input, shape index: {}]   ;;  %s1415_s1 = inlined_call_operand.hbm [shape: f32[100,128], index: 1, kind: input, shape index: {}]   ;;  %s1416_s2 = inlined_call_operand.hbm [shape: f32[8,128], index: 2, kind: input, shape index: {}]   ;;  %s1417_s3 = inlined_call_operand.vmem [shape: f32[1,128], index: 3, kind: input, shape index: {}]   ;;  %s1418_s4 = inlined_call_operand.vmem [shape: f32[1,128], index: 4, kind: input, shape index: {}]   ;;  %s1419_s5 = inlined_call_operand.hbm [shape: f32[2,8,128], index: 5, kind: output, shape index: {}]  }
   0x1   :  { %1430 = sst [smem:[#allocation36_spill]] %s1416_s2  ;;  %s714_s20 = scalar_lea.hbm %s1414_s0, 32 }
   0x2   :  { %p715_p0 = scmp.ne.s32.totalorder %s1414_s0, %s714_s20  ;;  %p718_p1 = scmp.lt.u32.totalorder %s714_s20, %s1414_s0 }
   0x4   :  { %p720_p2 = pnand %p718_p1, %p715_p0 }
   0x6   :  { %723 = shalt.err (!%p720_p2)  }
   0x7   :  { %s1032_s25 = smov [#allocation4]  }
   0x8   :  { %11 = dma.hbm_to_smem %s1414_s0, 32, %s1032_s25, [#allocation3] }
   0x9   :  { %996 = dma.done.wait [#allocation3], 32 }
   0xa   :  { %997 = vsyncadd [#allocation3], 4294967264 }
   0xb   :  { %13 = sfence }
   0xc   :  { %14 = vsyncpa [#allocation6], 0 }
   0xd   :  { %15 = vsyncpa [#allocation7], 0 }
   0xe   :  { %17 = vsyncpa [#allocation7 + $0x1], 0  ;;  %s1077_s28 = smov 0   ;;  %s1079_s29 = smov 0  }
   0xf   :  { %s1081_s30 = smov 0   ;;  %s1083_s6 = smov 0  }
  0x10   :  { %s1085_s7 = smov 0   ;;  %s1087_s8 = smov 0  }
  0x11 LB: > { %1431 = sst [smem:[#allocation31_spill]] %s1018_s30  ;;  %s559_s0 = sadd.s32 4294967295, %s1030_s8   ;;  %s1030_s8 = sphi %s1087_s8, %s23_s8   ;;  %s1026_s7 = sphi %s1085_s7, %s1454_s7   ;;  %s1022_s6 = sphi %s1083_s6, %s1453_s6   ;;  %s1018_s30 = sphi %s1081_s30, %s1452_s30   ;;  %s1014_s29 = sphi %s1079_s29, %s1456_s29   ;;  %s1010_s28 = sphi %s1077_s28, %s1455_s28  }
  0x12   : > { %1432 = sst [smem:[#allocation32_spill]] %s1026_s7  ;;  %s560_s9 = sadd.s32 4294967294, %s1030_s8  }
  0x13   : > { %s35_s10 = sadd.s32 1, %s1026_s7  ;;  %s112_s11 = sadd.s32 1, %s1018_s30 }
  0x14   : > { %p37_p3 = scmp.ge.s32.totalorder %s35_s10, 2  ;;  %p122_p4 = scmp.ne.s32.totalorder %s1018_s30, %s1014_s29 }
  0x15   : > { %p123_p5 = scmp.eq.s32.totalorder %s559_s0, 1  ;;  %p128_p6 = scmp.ne.s32.totalorder %s1014_s29, %s1010_s28 }
  0x16   : > { %s1458_s10 = smov (%p37_p3, %s35_s10), 0  ;;  %p129_p8 = scmp.eq.s32.totalorder %s560_s9, 1 }
  0x17   : > { %1433 = sst [smem:[#allocation33_spill]] %s1458_s10  ;;  %p1117_p7 = por %p123_p5, %p122_p4 }
  0x18   : > { %s107_s13 = ssub.s32 %s1026_s7, %s1458_s10  ;;  %p561_p9 = scmp.ge.s32.totalorder %s1030_s8, 1 }
  0x19   : > { %s1434_s12 = scalar_select %p1117_p7, 1, 0 }
  0x1a   : > { %p110_p10 = scmp.eq.s32.totalorder %s107_s13, 0  ;;  %p1124_p11 = por %p129_p8, %p128_p6 }
  0x1b   : > { %p136_p12 = scmp.lt.s32.totalorder %s1030_s8, 3  ;;  %p1136_p0 = scmp.eq.s32.totalorder %s559_s0, 0 }
  0x1c   : > { %s1435_s14 = scalar_select %p1124_p11, 1, 0 }
  0x1d   : > { %s1130_s15 = scalar_select %p110_p10, %s1018_s30, %s112_s11  }
  0x1e   : > { %1436 = sst [smem:[#allocation34_spill]] %s1435_s14  ;;  %p1132_p13 = pnand %p561_p9, %p136_p12 }
  0x1f   : > { %1437 = sst [smem:[#allocation35_spill]] %s1130_s15  ;;  %s1033_s18 = smov [#allocation5]  }
  0x20   : > { %s1438_s16 = scalar_select %p1132_p13, 1, 0 }
  0x21   : > { %s1439_s17 = scalar_select %p1136_p0, 1, 0 }
  0x22   : > { %p651_p1 = pneg %p1132_p13  ;;  %s151_s19 = sshll.u32 %s1033_s18, 4  ;;  %s152_s19 = int_to_ptr.vmem [resolvable:$true] %s151_s19 }
  0x23   : > { %s1441_s2 = sld [smem:[#allocation36_spill]] }
  0x24   : > { %p1144_p2 = pnand %p1136_p0, %p651_p1 }
  0x26   : > { %p726_p4 = pneg %p1144_p2 }
  0x29   : > { %s724_s23 = scalar_lea.hbm %s1441_s2, 128 }
  0x2a   : > { %p725_p3 = scmp.ne.s32.totalorder %s1441_s2, %s724_s23  ;;  %p731_p8 = scmp.lt.u32.totalorder %s724_s23, %s1441_s2 }
  0x2c   : > { %p727_p5 = pnand %p726_p4, %p725_p3 }
  0x2e   : > { %p728_p6 = pneg %p727_p5 }
  0x30   : > { %p733_p9 = pnand %p731_p8, %p728_p6 }
  0x32   : > { %736 = shalt.err (!%p733_p9)
}
  0x33   : > { %s737_s0 = scalar_lea.vmem %s152_s19, 128  ;;  %p745_p11 = scmp.lt.s32.totalorder %s152_s19, %s152_s19 }
  0x34   : > { %p738_p10 = scmp.ne.s32.totalorder %s152_s19, %s737_s0  ;;  %p746_p7 = scmp.lt.s32.totalorder %s737_s0, %s737_s0 }
  0x36   : > { %p740_p12 = pnand %p738_p10, %p726_p4  ;;  %p747_p0 = por %p746_p7, %p745_p11 }
  0x38   : > { %p741_p1 = pneg %p740_p12 }
  0x3a   : > { %p748_p13 = pnand %p747_p0, %p741_p1 }
  0x3c   : > { %751 = shalt.err (!%p748_p13)
}
  0x3d   : > { %654 = dma.hbm_to_vmem [thread:$0]  (!%p1144_p2), %s1441_s2, 128, %s152_s19, [#allocation6]  }
  0x3e   : > { %p1442_p3 = scmp.ne.s32.totalorder %s1438_s16, 0 }
  0x3f   : > { %p1443_p5 = scmp.ne.s32.totalorder (!%p1442_p3), %s1439_s17, 0 }
  0x40   : > { %170 = sbr.rel (%p1442_p3) target bundleno = 608 (0x260), region = 32 }
  0x47   : > { %999 = dma.done.wait (%p1443_p5), [#allocation6], 128  }
  0x48   : > { %1001 = vsyncadd (%p1443_p5), [#allocation6], 4294967168  ;;  %s1424_s13 = sand.u32 1, %s1014_s29   ;;  %s1172_s18 = sshll.u32 %s1022_s6, 7 }
  0x49   : > { %s565_s19 = sshll.u32 %s1424_s13, 3  ;;  %s197_s16 = sld [smem:[#allocation4 + %s1172_s18]] }
  0x4a   : > { %s222_s20 = sadd.s32 1, %s1172_s18  ;;  %s1178_s21 = scalar_lea.vmem [#allocation8], %s565_s19 }
  0x4b   : > { %s211_s17 = sshll.u32 %s1178_s21, 4  ;;  %s1181_s22 = sld [smem:[#allocation4 + %s222_s20]]  ;;  %s1183_s17 = int_to_ptr.vmem [resolvable:$true] %s211_s17 }
  0x4c   : > { %s230_s6 = scalar_lea.vmem %s1178_s21, 1 [#allocation8]  ;;  %s249_s24 = sadd.s32 2, %s1172_s18 }
  0x4d   : > { %s238_s23 = sshll.u32 %s230_s6, 4  ;;  %s1189_s25 = sld [smem:[#allocation4 + %s249_s24]]  ;;  %s1187_s23 = int_to_ptr.vmem [resolvable:$true] %s238_s23 }
  0x4e   : > { %s1204_s2 = scalar_lea.hbm %s1415_s1, 1664 }
  0x4f   : > { %p198_p7 = scmp.gt.s32.totalorder %s197_s16, 0  ;;  %p567_p11 = scmp.lt.s32.totalorder %s197_s16, 99 }
  0x51   : > { %s1460_s16 = smov (!%p198_p7, %s197_s16), 0  ;;  %p224_p13 = scmp.gt.s32.totalorder %s1181_s22, 0 }
  0x52   : > { %p574_p0 = scmp.lt.s32.totalorder %s1181_s22, 99  ;;  %s1462_s16 = smov (!%p567_p11, %s1460_s16), 99 }
  0x53   : > { %s225_s0 = scalar_select %p224_p13, %s1181_s22, 0 }
  0x54   : > { %s572_s9 = sshll.u32 %s1462_s16, 4  ;;  %p251_p2 = scmp.gt.s32.totalorder %s1189_s25, 0 }
  0x55   : > { %s203_s20 = scalar_lea.hbm %s1415_s1, %s572_s9  ;;  %p581_p4 = scmp.lt.s32.totalorder %s1189_s25, 99 }
  0x56   : > { %s752_s6 = scalar_lea.hbm %s203_s20, 16  ;;  %p755_p8 = scmp.lt.u32.totalorder %s203_s20, %s1415_s1 }
  0x57   : > { %p753_p6 = scmp.ne.s32.totalorder %s203_s20, %s752_s6  ;;  %p756_p9 = scmp.lt.u32.totalorder %s1204_s2, %s752_s6 }
  0x58   : > { %p758_p12 = scmp.lt.u32.totalorder %s752_s6, %s203_s20 }
  0x59   : > { %p757_p10 = por %p756_p9, %p755_p8 }
  0x5b   : > { %p759_p1 = por %p758_p12, %p757_p10 }
  0x5d   : > { %p760_p3 = pnand %p759_p1, %p753_p6 }
  0x5f   : > { %763 = shalt.err (!%p760_p3)  }
  0x60   : > { %s764_s16 = scalar_lea.vmem %s1183_s17, 16  ;;  %s1034_s13 = smov [#allocation8]  }
  0x61   : > { %p765_p5 = scmp.ne.s32.totalorder %s1183_s17, %s764_s16  ;;  %s766_s9 = sshll.u32 %s1034_s13, 4  ;;  %s1212_s9 = int_to_ptr.vmem [resolvable:$false] %s766_s9 }
  0x62   : > { %s1215_s26 = scalar_lea.vmem %s1212_s9, 256  ;;  %p1428_p7 = scmp.lt.s32.totalorder %s1183_s17, %s1212_s9 }
  0x63   : > { %p770_p11 = scmp.lt.s32.totalorder %s1215_s26, %s764_s16 }
  0x65   : > { %p771_p13 = por %p770_p11, %p1428_p7 }
  0x67   : > { %p772_p6 = pnand %p771_p13, %p765_p5 }
  0x69   : > { %775 = shalt.err (!%p772_p6)  }
  0x6a   : > { %214 = dma.hbm_to_vmem [thread:$0]  %s203_s20, 16, %s1183_s17, [#allocation2] }
  0x6b   : > { %s1464_s0 = smov (!%p574_p0, %s225_s0), 99  ;;  %s1444_s19 = scalar_lea.vmem %s1178_s21, 2 [#allocation8] }
  0x6c   : > { %s252_s27 = scalar_select %p251_p2, %s1189_s25, 0 }
  0x6d   : > { %s579_s11 = sshll.u32 %s1464_s0, 4  ;;  %s265_s6 = sshll.u32 %s1444_s19, 4  ;;  %s1234_s6 = int_to_ptr.vmem [resolvable:$true] %s265_s6 }
  0x6e   : > { %s229_s13 = scalar_lea.hbm %s1415_s1, %s579_s11 }
  0x6f   : > { %s776_s10 = scalar_lea.hbm %s229_s13, 16  ;;  %p779_p9 = scmp.lt.u32.totalorder %s229_s13, %s1415_s1 }
  0x70   : > { %p777_p8 = scmp.ne.s32.totalorder %s229_s13, %s776_s10  ;;  %p780_p10 = scmp.lt.u32.totalorder %s1204_s2, %s776_s10 }
  0x71   : > { %p782_p0 = scmp.lt.u32.totalorder %s776_s10, %s229_s13 }
  0x72   : > { %p781_p12 = por %p780_p10, %p779_p9 }
  0x74   : > { %p783_p1 = por %p782_p0, %p781_p12 }
  0x76   : > { %p784_p2 = pnand %p783_p1, %p777_p8 }
  0x78   : > { %787 = shalt.err (!%p784_p2)  }
  0x79   : > { %s788_s22 = scalar_lea.vmem %s1187_s23, 16  ;;  %p793_p5 = scmp.lt.s32.totalorder %s1187_s23, %s1212_s9 }
  0x7a   : > { %p789_p3 = scmp.ne.s32.totalorder %s1187_s23, %s788_s22  ;;  %p794_p11 = scmp.lt.s32.totalorder %s1215_s26, %s788_s22 }
  0x7c   : > { %p795_p13 = por %p794_p11, %p793_p5 }
  0x7e   : > { %p796_p6 = pnand %p795_p13, %p789_p3 }
  0x80   : > { %799 = shalt.err (!%p796_p6)  }
  0x81   : > { %241 = dma.hbm_to_vmem [thread:$0]  %s229_s13, 16, %s1187_s23, [#allocation2] }
  0x82   : > { %s1466_s27 = smov (!%p581_p4, %s252_s27), 99  ;;  %s1445_s7 = sadd.s32 3, %s1172_s18 }
  0x83   : > { %s1250_s10 = sld [smem:[#allocation4 + %s1445_s7]]  ;;  %s284_s15 = scalar_lea.vmem %s1178_s21, 3 [#allocation8] }
  0x84   : > { %s586_s0 = sshll.u32 %s1466_s27, 4  ;;  %s292_s24 = sshll.u32 %s284_s15, 4  ;;  %s1268_s24 = int_to_ptr.vmem [resolvable:$true] %s292_s24 }
  0x85   : > { %s256_s19 = scalar_lea.hbm %s1415_s1, %s586_s0 }
  0x86   : > { %s800_s16 = scalar_lea.hbm %s256_s19, 16  ;;  %p803_p9 = scmp.lt.u32.totalorder %s256_s19, %s1415_s1 }
  0x87   : > { %p801_p8 = scmp.ne.s32.totalorder %s256_s19, %s800_s16  ;;  %p804_p10 = scmp.lt.u32.totalorder %s1204_s2, %s800_s16 }
  0x88   : > { %p806_p0 = scmp.lt.u32.totalorder %s800_s16, %s256_s19 }
  0x89   : > { %p805_p12 = por %p804_p10, %p803_p9 }
  0x8b   : > { %p807_p4 = por %p806_p0, %p805_p12 }
  0x8d   : > { %p808_p1 = pnand %p807_p4, %p801_p8 }
  0x8f   : > { %811 = shalt.err (!%p808_p1)  }
  0x90   : > { %s812_s23 = scalar_lea.vmem %s1234_s6, 16  ;;  %p817_p3 = scmp.lt.s32.totalorder %s1234_s6, %s1212_s9 }
  0x91   : > { %p813_p2 = scmp.ne.s32.totalorder %s1234_s6, %s812_s23  ;;  %p818_p5 = scmp.lt.s32.totalorder %s1215_s26, %s812_s23 }
  0x93   : > { %p819_p11 = por %p818_p5, %p817_p3 }
  0x95   : > { %p820_p13 = pnand %p819_p11, %p813_p2 }
  0x97   : > { %823 = shalt.err (!%p820_p13)  }
  0x98   : > { %268 = dma.hbm_to_vmem [thread:$0]  %s256_s19, 16, %s1234_s6, [#allocation2] }
  0x99   : > { %s303_s30 = sadd.s32 4, %s1172_s18  ;;  %s311_s25 = scalar_lea.vmem %s1178_s21, 4 [#allocation8] }
  0x9a   : > { %s1270_s27 = sld [smem:[#allocation4 + %s303_s30]]  ;;  %p278_p6 = scmp.gt.s32.totalorder %s1250_s10, 0 }
  0x9b   : > { %p588_p8 = scmp.lt.s32.totalorder %s1250_s10, 99  ;;  %s319_s13 = sshll.u32 %s311_s25, 4  ;;  %s1280_s13 = int_to_ptr.vmem [resolvable:$true] %s319_s13 }
  0x9c   : > { %s330_s7 = sadd.s32 5, %s1172_s18  ;;  %s1468_s10 = smov (!%p278_p6, %s1250_s10), 0 }
  0x9d   : > { %s1276_s15 = sld [smem:[#allocation4 + %s330_s7]]  ;;  %s338_s0 = scalar_lea.vmem %s1178_s21, 5 [#allocation8] }
  0x9e   : > { %s1470_s10 = smov (!%p588_p8, %s1468_s10), 99  ;;  %s1286_s16 = sshll.u32 %s338_s0, 4  ;;  %s347_s16 = int_to_ptr.vmem [resolvable:$true] %s1286_s16 }
  0x9f   : > { %s593_s6 = sshll.u32 %s1470_s10, 4 }
  0xa0   : > { %p305_p9 = scmp.gt.s32.totalorder %s1270_s27, 0  ;;  %p595_p10 = scmp.lt.s32.totalorder %s1270_s27, 99 }
  0xa1   : > { %s283_s19 = scalar_lea.hbm %s1415_s1, %s593_s6 }
  0xa2   : > { %s824_s22 = scalar_lea.hbm %s283_s19, 16  ;;  %p827_p0 = scmp.lt.u32.totalorder %s283_s19, %s1415_s1 }
  0xa3   : > { %p825_p12 = scmp.ne.s32.totalorder %s283_s19, %s824_s22  ;;  %p828_p4 = scmp.lt.u32.totalorder %s1204_s2, %s824_s22 }
  0xa4   : > { %p830_p2 = scmp.lt.u32.totalorder %s824_s22, %s283_s19 }
  0xa5   : > { %p829_p1 = por %p828_p4, %p827_p0 }
  0xa7   : > { %p831_p3 = por %p830_p2, %p829_p1 }
  0xa9   : > { %p832_p5 = pnand %p831_p3, %p825_p12 }
  0xab   : > { %835 = shalt.err (!%p832_p5)  }
  0xac   : > { %s836_s10 = scalar_lea.vmem %s1268_s24, 16  ;;  %p841_p13 = scmp.lt.s32.totalorder %s1268_s24, %s1212_s9 }
  0xad   : > { %p837_p11 = scmp.ne.s32.totalorder %s1268_s24, %s836_s10  ;;  %p842_p6 = scmp.lt.s32.totalorder %s1215_s26, %s836_s10 }
  0xaf   : > { %p843_p8 = por %p842_p6, %p841_p13 }
  0xb1   : > { %p844_p7 = pnand %p843_p8, %p837_p11 }
  0xb3   : > { %847 = shalt.err (!%p844_p7)  }
  0xb4   : > { %295 = dma.hbm_to_vmem [thread:$0]  %s283_s19, 16, %s1268_s24, [#allocation2] }
  0xb5   : > { %s306_s25 = scalar_select %p305_p9, %s1270_s27, 0 }
  0xb6   : > { %p332_p12 = scmp.gt.s32.totalorder %s1276_s15, 0  ;;  %p602_p0 = scmp.lt.s32.totalorder %s1276_s15, 99 }
  0xb7   : > { %s1472_s25 = smov (!%p595_p10, %s306_s25), 99  ;;  %s357_s6 = sadd.s32 6, %s1172_s18 }
  0xb8   : > { %s333_s7 = scalar_select %p332_p12, %s1276_s15, 0 }
  0xb9   : > { %s600_s0 = sshll.u32 %s1472_s25, 4  ;;  %s1310_s23 = sld [smem:[#allocation4 + %s357_s6]] }
  0xba   : > { %s310_s22 = scalar_lea.hbm %s1415_s1, %s600_s0 }
  0xbb   : > { %s848_s30 = scalar_lea.hbm %s310_s22, 16  ;;  %p851_p4 = scmp.lt.u32.totalorder %s310_s22, %s1415_s1 }
  0xbc   : > { %p849_p7 = scmp.ne.s32.totalorder %s310_s22, %s848_s30  ;;  %p852_p9 = scmp.lt.u32.totalorder %s1204_s2, %s848_s30 }
  0xbd   : > { %p854_p2 = scmp.lt.u32.totalorder %s848_s30, %s310_s22 }
  0xbe   : > { %p853_p1 = por %p852_p9, %p851_p4 }
  0xc0   : > { %p855_p3 = por %p854_p2, %p853_p1 }
  0xc2   : > { %p856_p10 = pnand %p855_p3, %p849_p7 }
  0xc4   : > { %859 = shalt.err (!%p856_p10)  }
  0xc5   : > { %s860_s24 = scalar_lea.vmem %s1280_s13, 16  ;;  %p865_p11 = scmp.lt.s32.totalorder %s1280_s13, %s1212_s9 }
  0xc6   : > { %p861_p5 = scmp.ne.s32.totalorder %s1280_s13, %s860_s24  ;;  %p866_p13 = scmp.lt.s32.totalorder %s1215_s26, %s860_s24 }
  0xc8   : > { %p867_p6 = por %p866_p13, %p865_p11 }
  0xca   : > { %p868_p8 = pnand %p867_p6, %p861_p5 }
  0xcc   : > { %871 = shalt.err (!%p868_p8)  }
  0xcd   : > { %322 = dma.hbm_to_vmem [thread:$0]  %s310_s22, 16, %s1280_s13, [#allocation2] }
  0xce   : > { %s1474_s7 = smov (!%p602_p0, %s333_s7), 99  ;;  %s365_s27 = scalar_lea.vmem %s1178_s21, 6 [#allocation8] }
  0xcf   : > { %s607_s14 = sshll.u32 %s1474_s7, 4  ;;  %s384_s6 = sadd.s32 7, %s1172_s18 }
  0xd0   : > { %s337_s0 = scalar_lea.hbm %s1415_s1, %s607_s14 }
  0xd1   : > { %s872_s20 = scalar_lea.hbm %s337_s0, 16  ;;  %p875_p7 = scmp.lt.u32.totalorder %s337_s0, %s1415_s1 }
  0xd2   : > { %p873_p12 = scmp.ne.s32.totalorder %s337_s0, %s872_s20  ;;  %p876_p4 = scmp.lt.u32.totalorder %s1204_s2, %s872_s20 }
  0xd3   : > { %p878_p1 = scmp.lt.u32.totalorder %s872_s20, %s337_s0 }
  0xd4   : > { %p877_p9 = por %p876_p4, %p875_p7 }
  0xd6   : > { %p879_p2 = por %p878_p1, %p877_p9 }
  0xd8   : > { %p880_p3 = pnand %p879_p2, %p873_p12 }
  0xda   : > { %883 = shalt.err (!%p880_p3)  }
  0xdb   : > { %s884_s13 = scalar_lea.vmem %s347_s16, 16  ;;  %p889_p10 = scmp.lt.s32.totalorder %s347_s16, %s1212_s9 }
  0xdc   : > { %p885_p0 = scmp.ne.s32.totalorder %s347_s16, %s884_s13  ;;  %p890_p5 = scmp.lt.s32.totalorder %s1215_s26, %s884_s13 }
  0xde   : > { %p891_p11 = por %p890_p5, %p889_p10 }
  0xe0   : > { %p892_p13 = pnand %p891_p11, %p885_p0 }
  0xe2   : > { %895 = shalt.err (!%p892_p13)  }
  0xe3   : > { %349 = dma.hbm_to_vmem [thread:$0]  %s337_s0, 16, %s347_s16, [#allocation2] }
  0xe4   : > { %p359_p6 = scmp.gt.s32.totalorder %s1310_s23, 0  ;;  %p609_p8 = scmp.lt.s32.totalorder %s1310_s23, 99 }
  0xe5   : > { %s373_s15 = sshll.u32 %s365_s27, 4  ;;  %s385_s7 = sld [smem:[#allocation4 + %s384_s6]]  ;;  %s374_s15 = int_to_ptr.vmem [resolvable:$true] %s373_s15 }
  0xe6   : > { %s1476_s23 = smov (!%p359_p6, %s1310_s23), 0  ;;  %s392_s10 = scalar_lea.vmem %s1178_s21, 7 [#allocation8] }
  0xe7   : > { %s1478_s23 = smov (!%p609_p8, %s1476_s23), 99 }
  0xe8   : > { %s614_s22 = sshll.u32 %s1478_s23, 4 }
  0xe9   : > { %s364_s19 = scalar_lea.hbm %s1415_s1, %s614_s22 }
  0xea   : > { %s896_s16 = scalar_lea.hbm %s364_s19, 16  ;;  %p899_p4 = scmp.lt.u32.totalorder %s364_s19, %s1415_s1 }
  0xeb   : > { %p386_p12 = scmp.gt.s32.totalorder %s385_s7, 0  ;;  %p897_p7 = scmp.ne.s32.totalorder %s364_s19, %s896_s16 }
  0xec   : > { %p900_p9 = scmp.lt.u32.totalorder %s1204_s2, %s896_s16  ;;  %p902_p2 = scmp.lt.u32.totalorder %s896_s16, %s364_s19 }
  0xee   : > { %p901_p1 = por %p900_p9, %p899_p4 }
  0xf0   : > { %p903_p3 = por %p902_p2, %p901_p1 }
  0xf2   : > { %p904_p0 = pnand %p903_p3, %p897_p7 }
  0xf4   : > { %907 = shalt.err (!%p904_p0)  }
  0xf5   : > { %s908_s27 = scalar_lea.vmem %s374_s15, 16  ;;  %p913_p5 = scmp.lt.s32.totalorder %s374_s15, %s1212_s9 }
  0xf6   : > { %p909_p10 = scmp.ne.s32.totalorder %s374_s15, %s908_s27  ;;  %p914_p11 = scmp.lt.s32.totalorder %s1215_s26, %s908_s27 }
  0xf8   : > { %p915_p13 = por %p914_p11, %p913_p5 }
  0xfa   : > { %p916_p6 = pnand %p915_p13, %p909_p10 }
  0xfc   : > { %919 = shalt.err (!%p916_p6)  }
  0xfd   : > { %376 = dma.hbm_to_vmem [thread:$0]  %s364_s19, 16, %s374_s15, [#allocation2] }
  0xfe   : > { %s387_s23 = scalar_select %p386_p12, %s385_s7, 0 }
  0xff   : > { %p616_p8 = scmp.lt.s32.totalorder %s385_s7, 99  ;;  %s400_s6 = sshll.u32 %s392_s10, 4  ;;  %s401_s6 = int_to_ptr.vmem [resolvable:$true] %s400_s6 }
 0x101   : > { %s1480_s23 = smov (!%p616_p8, %s387_s23), 99 }
 0x102   : > { %s621_s20 = sshll.u32 %s1480_s23, 4 }
 0x103   : > { %s391_s13 = scalar_lea.hbm %s1415_s1, %s621_s20 }
 0x104   : > { %s920_s22 = scalar_lea.hbm %s391_s13, 16  ;;  %p923_p4 = scmp.lt.u32.totalorder %s391_s13, %s1415_s1 }
 0x105   : > { %p921_p7 = scmp.ne.s32.totalorder %s391_s13, %s920_s22  ;;  %p924_p9 = scmp.lt.u32.totalorder %s1204_s2, %s920_s22 }
 0x106   : > { %p926_p2 = scmp.lt.u32.totalorder %s920_s22, %s391_s13 }
 0x107   : > { %p925_p1 = por %p924_p9, %p923_p4 }
 0x109   : > { %p927_p3 = por %p926_p2, %p925_p1 }
 0x10b   : > { %p928_p12 = pnand %p927_p3, %p921_p7 }
 0x10d   : > { %931 = shalt.err (!%p928_p12)  }
 0x10e   : > { %s932_s15 = scalar_lea.vmem %s401_s6, 16  ;;  %p937_p10 = scmp.lt.s32.totalorder %s401_s6, %s1212_s9 }
 0x10f   : > { %p933_p0 = scmp.ne.s32.totalorder %s401_s6, %s932_s15  ;;  %p938_p5 = scmp.lt.s32.totalorder %s1215_s26, %s932_s15 }
 0x111   : > { %p939_p11 = por %p938_p5, %p937_p10 }
 0x113   : > { %p940_p13 = pnand %p939_p11, %p933_p0 }
 0x115   : > { %943 = shalt.err (!%p940_p13)  }
 0x116   : > { %403 = dma.hbm_to_vmem [thread:$0]  %s391_s13, 16, %s401_s6, [#allocation2] }
 0x117   : > { %1002 = dma.done.wait [#allocation2], 128 }
 0x118   : > { %1003 = vsyncadd [#allocation2], 4294967168  ;;  %v420_v0 = vld [vmem:[%s1178_s21] sm:$0xff]  ;;  %v421_v1 = vld [vmem:[#allocation5] sm:$0xff]  ;;  %s465_s0 = scalar_lea.hbm %s1419_s5, %s1172_s18  ;;  %s1446_s27 = sand.u32 1, %s1014_s29  }
 0x119   : > { %v422_v2 = vadd.f32 %v421_v1, %v420_v0  ;;  %v622_v11 = vld [vmem:[%s1417_s3] ss:$0 sm:$0xff]  ;;  %s453_s23 = scalar_lea.sflag [#allocation7], %s1446_s27  ;;  %s944_s6 = scalar_lea.vmem %s1183_s17, 128 }
 0x11a   : > { %v623_v13 = vld [vmem:[%s1418_s4] ss:$0 sm:$0xff]  ;;  %p945_p6 = scmp.ne.s32.totalorder %s1183_s17, %s944_s6  ;;  %p1447_p8 = scmp.ne.s32.totalorder %s1434_s12, 0 }
 0x11b   : > { %423 = vadd.xlane.f32.xlu0 %v422_v2  ;;  %p952_p9 = scmp.lt.s32.totalorder %s1215_s26, %s944_s6  ;;  %p1448_p1 = scmp.lt.s32.totalorder %s1183_s17, %s1212_s9 }
 0x11c   : > { %p946_p7 = pnand %p945_p6, %p1447_p8 }
 0x11d   : > { %p953_p2 = por %p952_p9, %p1448_p1 }
 0x11e   : > { %p947_p4 = pneg %p946_p7 }
 0x120   : > { %p954_p3 = pnand %p953_p2, %p947_p4 }
 0x1a8   : > { %v424_v3 = vpop.xlane.xlu0 %423 }
 0x1a9   : > { %v426_v4 = vmul.f32 0.0078125, %v424_v3 }
 0x1ab   : > { %v427_v5 = vsub.f32 %v422_v2, %v426_v4 }
 0x1ad   : > { %v428_v6 = vmul.f32 %v427_v5, %v427_v5 }
 0x1af   : > { %429 = vadd.xlane.f32.xlu0 %v428_v6 }
 0x23c   : > { %v430_v7 = vpop.xlane.xlu0 %429 }
 0x23d   : > { %v431_v8 = vmul.f32 0.0078125, %v430_v7 }
 0x23f   : > { %v432_v9 = vadd.f32 1e-12, %v431_v8 }
 0x241   : > { %712 = vrsqrt.f32 %v432_v9 }
 0x24b   : > { %v713_v10 = vpop.eup %712 }
 0x24c   : > { %v434_v12 = vmul.f32 %v713_v10, %v427_v5 }
 0x24e   : > { %v442_v14 = vmul.f32 %v622_v11, %v434_v12 }
 0x250   : > { %v450_v15 = vadd.f32 %v623_v13, %v442_v14 }
 0x252   : > { %451 = vst [vmem:[%s1178_s21] sm:$0xff] %v450_v15 }
 0x253   : > { %957 = shalt.err (!%p954_p3)
}
 0x254   : > { %s958_s20 = scalar_lea.hbm %s465_s0, 128  ;;  %s962_s11 = scalar_lea.hbm %s1419_s5, 256 }
 0x255   : > { %p959_p12 = scmp.ne.s32.totalorder %s465_s0, %s958_s20  ;;  %p963_p5 = scmp.lt.u32.totalorder %s465_s0, %s1419_s5 }
 0x256   : > { %p964_p11 = scmp.lt.u32.totalorder %s962_s11, %s958_s20  ;;  %p966_p6 = scmp.lt.u32.totalorder %s958_s20, %s465_s0 }
 0x257   : > { %p960_p0 = pnand %p959_p12, %p1447_p8 }
 0x258   : > { %p965_p13 = por %p964_p11, %p963_p5 }
 0x259   : > { %p961_p10 = pneg %p960_p0 }
 0x25a   : > { %p967_p7 = por %p966_p6, %p965_p13 }
 0x25c   : > { %p968_p4 = pnand %p967_p7, %p961_p10 }
 0x25e   : > { %971 = shalt.err (!%p968_p4)
}
 0x25f   : > { %649 = dma.vmem_to_hbm [thread:$0]  (%p1447_p8), %s1183_s17, 128, %s465_s0, %s453_s23  }
 0x260 PF: > { %s1449_s9 = sld [smem:[#allocation34_spill]]  ;;  %p661_p9 = scmp.ge.s32.totalorder %s1030_s8, 2 }
 0x261   : > { %s479_s26 = sand.u32 1, %s1010_s28  }
 0x262   : > { %s480_s22 = scalar_lea.sflag [#allocation7], %s479_s26 }
 0x266   : > { %p1450_p1 = scmp.ne.s32.totalorder %s1449_s9, 0 }
 0x268   : > { %p656_p2 = pnand %p661_p9, %p1450_p1 }
 0x26a   : > { %1005 = dma.done.wait (!%p656_p2), %s480_s22, 128  }
 0x26b   : > { %1007 = vsyncadd (!%p656_p2), %s480_s22, 4294967168  ;;  %s23_s8 = sadd.s32 1, %s1030_s8   ;;  %s1451_s24 = sld [smem:[#allocation31_spill]] }
 0x26c   : > { %p20_p3 = scmp.ge.s32.totalorder %s23_s8, 4   ;;  %s1452_s30 = sld [smem:[#allocation35_spill]] }
 0x26d   : > { %s1453_s6 = sld [smem:[#allocation32_spill]]  ;;  %s1454_s7 = sld [smem:[#allocation33_spill]] }
 0x26e   : > { %s1455_s28 = smov %s1014_s29  ;;  %22 = sbr.rel (!%p20_p3) target bundleno = 17 (0x11), region = 117 }
 0x271   : > { %s1456_s29 = smov %s1451_s24 }
 0x275   :  { %485 = vsyncpa [#allocation6], 1 }
 0x276   :  { %487 = vsyncpa [#allocation6 + $0x1], 1 }
 0x277   :  { %488 = vsyncpa [#allocation7], 1 }
 0x278   :  { %490 = vsyncpa [#allocation7 + $0x1], 1 }
 0x279   :  { %491 = vsyncmov [#allocation2] }
 0x27c   :  { %s492_s12 = vpop.sfrf %491 }
 0x27d   :  { %p628_p8 = scmp.ne.s32.totalorder %s492_s12, 0 }
 0x27f   :  { %496 = shalt.err (%p628_p8)  }

</bundles_post_ra>
